<compile_context>
chip_gen: v7x
topology: tpu7x:2x2x1
jax: 0.10.0
libtpu: 0.0.40
codegen_flags: <defaults>
</compile_context>

<pallas_src>
import jax
import jax.numpy as jnp
from jax.experimental import pallas as pl
from jax.experimental.pallas import tpu as pltpu

NEG_SLOPE = 0.01   # torch.nn.LeakyReLU default
BN_EPS = 1e-5      # torch.nn.BatchNorm2d default


def value_head_kernel(scal_ref, wc_ref, x_ref, w1_ref, b1_ref, w2_ref, out_ref):
    """Fused ValueHead forward on one batch tile (batch on sublanes).

    scal_ref : SMEM f32[2]         [folded conv+BN bias, fc2 bias]
    wc_ref   : SMEM f32[C]         per-channel conv weight * BN scale
    x_ref    : VMEM f32[TB, C*81]  natural-layout input tile
    w1_ref   : VMEM f32[81, 64]    fc1 weight (x @ w orientation)
    b1_ref   : VMEM f32[1, 64]     fc1 bias row
    w2_ref   : VMEM f32[1, 64]     fc2 weight row
    out_ref  : VMEM f32[TB, 1]     output tile
    """
    C = wc_ref.shape[0]
    S = w1_ref.shape[0]   # 81

    # 1x1 Conv2d(C -> 1) with eval-BN folded in: per-channel scalar MAC on the
    # VPU, combined as a pairwise tree so the f32 add chain pipelines across
    # the VALU slots instead of serializing.
    parts = [x_ref[:, c * S:(c + 1) * S] * wc_ref[c] for c in range(C)]
    while len(parts) > 1:
        nxt = [parts[i] + parts[i + 1] for i in range(0, len(parts) - 1, 2)]
        if len(parts) % 2:
            nxt.append(parts[-1])
        parts = nxt
    conv = parts[0] + scal_ref[0]                                    # (TB, 81)
    # TODO(synk): for large C (>= ~16) move the C-contraction to the MXU as a
    # (TB, C*81) @ block-folded (C*81, 81) matmul instead of VPU MACs.

    # LeakyReLU as max(x, slope*x) (identical for 0 < slope < 1, fewer VPU ops).
    a0 = jnp.maximum(conv, conv * NEG_SLOPE)

    # fc1 on the MXU: (TB, 81) @ (81, 64).
    h1 = jnp.dot(a0, w1_ref[...], preferred_element_type=jnp.float32) + b1_ref[...]
    a1 = jnp.maximum(h1, h1 * NEG_SLOPE)                             # (TB, 64)

    # fc2 (64 -> 1) as an exact-f32 lane reduction (keeps the 1-wide
    # contraction off the MXU; XLU slot is otherwise idle).
    h2 = jnp.sum(a1 * w2_ref[...], axis=-1, keepdims=True) + scal_ref[1]   # (TB, 1)

    out_ref[...] = jnp.tanh(h2)


def _round_up(n, m):
    return ((n + m - 1) // m) * m


def _vmem_capacity_bytes():
    try:
        return int(getattr(pltpu.get_tpu_info(), 'vmem_capacity_bytes'))
    except Exception:
        return 64 * 1024 * 1024   # conservative (v7x per-TensorCore VMEM)


def _choose_tb(B, C, S, tb_max, vmem_budget):
    """Batch-tile rows per grid step, sized from a VMEM budget."""
    lanes_x = _round_up(C * S, 128)
    # Per-row VMEM: double-buffered input block + ~10 lane-tiles of f32
    # intermediates (channel partials, conv, a0, h1, a1, output).
    per_row_bytes = (2 * lanes_x + 10 * 128) * 4
    tb_fit = max(8, min(tb_max, (vmem_budget // per_row_bytes) // 8 * 8))
    if B <= tb_fit and B < 256:
        return B            # single block == full array: no padding at all
    # Enough tiles that (a) each fits VMEM, (b) there are >= 2 tiles so both
    # v7x TensorCores get work, (c) ragged waste in the last tile is < 8 rows.
    n_tiles = max(pl.cdiv(B, tb_fit), 2)
    return min(tb_fit, _round_up(pl.cdiv(B, n_tiles), 8))


def init_params(num_channels, key):
    """Deterministic synthetic parameters (shapes from ValueHead.__init__)."""
    ks = jax.random.split(key, 5)
    u = lambda k, shape, s: jax.random.uniform(k, shape, jnp.float32, -s, s)
    return {
        # Conv2d(num_channels, 1, kernel_size=1): weight (1, C, 1, 1) -> (C, 1)
        'conv_w': u(ks[0], (num_channels, 1), 0.5),
        'conv_b': jnp.float32(0.1),
        # BatchNorm2d(1) eval-mode running stats / affine
        'bn_gamma': jnp.float32(1.2),
        'bn_beta': jnp.float32(-0.05),
        'bn_mean': jnp.float32(0.03),
        'bn_var': jnp.float32(0.9),
        # Linear(81, 64): torch weight (64, 81) stored transposed as (81, 64)
        'w1': u(ks[1], (81, 64), 0.1),
        'b1': u(ks[2], (1, 64), 0.1),
        # Linear(64, 1): torch weight (1, 64) stored transposed as (64, 1)
        'w2': u(ks[3], (64, 1), 0.1),
        'b2': u(ks[4], (1, 1), 0.1),
    }


def value_head_forward(x_nchw, params, *, tb_max=4096):
    B, C, H, W = x_nchw.shape
    assert H == 9 and W == 9, "ValueHead hard-codes a 9x9 board (fc1: 81 -> 64)"
    S = H * W

    # Fold conv bias + eval-mode BatchNorm into the 1x1 conv (host side, O(C)).
    scale = params['bn_gamma'] * jax.lax.rsqrt(params['bn_var'] + BN_EPS)
    wc = (params['conv_w'][:, 0] * scale).astype(jnp.float32)                 # (C,)
    bias_fold = (params['conv_b'] - params['bn_mean']) * scale + params['bn_beta']
    scal = jnp.stack([bias_fold, params['b2'][0, 0]]).astype(jnp.float32)     # (2,)

    w1 = params['w1'].astype(jnp.float32)                  # (81, 64)
    b1 = params['b1'].reshape(1, 64).astype(jnp.float32)   # (1, 64)
    w2 = params['w2'].reshape(1, 64).astype(jnp.float32)   # (1, 64)

    vmem_cap = _vmem_capacity_bytes()
    vmem_limit = int(min(vmem_cap * 3 // 4, 96 * 1024 * 1024))
    TB = _choose_tb(B, C, S, tb_max, vmem_limit // 2)
    grid_n = pl.cdiv(B, TB)
    B_pad = grid_n * TB

    # Natural layout into the kernel: (B, C, 9, 9) -> (B, C*81) is a contiguous
    # (free) reshape -- no host-side transpose pass over HBM.
    x2d = x_nchw.reshape(B, C * S).astype(jnp.float32)
    if B_pad != B:
        # Ragged batch: zero-pad the tail rows (one extra pass over x).  Batches
        # that divide the tile (the common producer-controlled case) are zero-copy.
        # TODO(synk): rely on Pallas partial-block write masking to drop this pad.
        x2d = jnp.pad(x2d, ((0, B_pad - B), (0, 0)))

    smem = pl.BlockSpec(memory_space=pltpu.MemorySpace.SMEM)
    flops_per_row = 2 * C * S + 2 * S + 2 * S * 64 + 3 * 64 + 2 * 64
    cost = pl.CostEstimate(
        flops=int(B_pad * flops_per_row),
        transcendentals=int(B_pad),
        bytes_accessed=int(B_pad * (C * S + 1) * 4 + (S * 64 + 2 * 64 + C + 2) * 4),
    )

    out = pl.pallas_call(
        value_head_kernel,
        out_shape=jax.ShapeDtypeStruct((B_pad, 1), jnp.float32),
        grid=(grid_n,),
        in_specs=[
            smem,                                               # scal (SMEM)
            smem,                                               # wc (SMEM)
            pl.BlockSpec((TB, C * S), lambda i: (i, 0)),        # x batch tile
            pl.BlockSpec((S, 64), lambda i: (0, 0)),            # w1 (resident)
            pl.BlockSpec((1, 64), lambda i: (0, 0)),            # b1
            pl.BlockSpec((1, 64), lambda i: (0, 0)),            # w2 row
        ],
        out_specs=pl.BlockSpec((TB, 1), lambda i: (i, 0)),
        compiler_params=pltpu.CompilerParams(
            dimension_semantics=("parallel",),
            vmem_limit_bytes=vmem_limit),
        cost_estimate=cost,
    )(scal, wc, x2d, w1, b1, w2)

    return out[:B]


def value_head_ref(x_nchw, params):
    """Pure-JAX reference mirroring the PyTorch forward (eval-mode BN)."""
    B, C, H, W = x_nchw.shape
    conv = jnp.einsum('bchw,c->bhw', x_nchw, params['conv_w'][:, 0]) + params['conv_b']
    bn = ((conv - params['bn_mean']) * jax.lax.rsqrt(params['bn_var'] + BN_EPS)
          * params['bn_gamma'] + params['bn_beta'])
    a0 = jnp.where(bn >= 0, bn, bn * NEG_SLOPE).reshape(B, H * W)
    h1 = a0 @ params['w1'] + params['b1']
    a1 = jnp.where(h1 >= 0, h1, h1 * NEG_SLOPE)
    return jnp.tanh(a1 @ params['w2'] + params['b2'])


if __name__ == "__main__":
    key = jax.random.PRNGKey(0)
    k_p, k1, k2, k3 = jax.random.split(key, 4)

    C = 4                                   # hparams.num_channels = 4
    params = init_params(C, k_p)

    # Small shape: single full-array block (grid of 1, no padding).
    x = jax.random.normal(k1, (2, C, 9, 9), dtype=jnp.float32)      # NCHW
    out = jax.block_until_ready(value_head_forward(x, params))
    ref = value_head_ref(x, params)
    assert out.shape == (2, 1)
    assert jnp.allclose(out, ref, atol=1e-4, rtol=1e-4), (out, ref)

    # Multi-tile with a ragged tail (TB=104, grid=3, small zero-pad fallback).
    x2 = jax.random.normal(k2, (300, C, 9, 9), dtype=jnp.float32)
    out2 = jax.block_until_ready(value_head_forward(x2, params, tb_max=128))
    ref2 = value_head_ref(x2, params)
    assert out2.shape == (300, 1)
    assert jnp.allclose(out2, ref2, atol=1e-4, rtol=1e-4)

    # Default tiling: batch splits into 2 even tiles (megacore path, no pad).
    x3 = jax.random.normal(k3, (640, C, 9, 9), dtype=jnp.float32)
    out3 = jax.block_until_ready(value_head_forward(x3, params))
    ref3 = value_head_ref(x3, params)
    assert out3.shape == (640, 1)
    assert jnp.allclose(out3, ref3, atol=1e-4, rtol=1e-4)

    print("KERNEL_OK")
</pallas_src>

<mosaic_0001>
module attributes {stable_mosaic.version = 11 : i64} {
  func.func @value_head_kernel(%arg0: i32, %arg1: memref<2xf32, #tpu.memory_space<smem>>, %arg2: memref<4xf32, #tpu.memory_space<smem>>, %arg3: memref<2x324xf32, #tpu.memory_space<vmem>>, %arg4: memref<81x64xf32, #tpu.memory_space<vmem>>, %arg5: memref<1x64xf32, #tpu.memory_space<vmem>>, %arg6: memref<1x64xf32, #tpu.memory_space<vmem>>, %arg7: memref<2x1xf32, #tpu.memory_space<vmem>>) attributes {dimension_semantics = [#tpu.dimension_semantics<parallel>], iteration_bounds = array<i64: 1>, scalar_prefetch = 0 : i64, scratch_operands = 0 : i64, tpu.core_type = #tpu.core_type<tc>, window_params = [{transform_indices = @transform_0, window_bounds = array<i64: 2>}, {transform_indices = @transform_1, window_bounds = array<i64: 4>}, {transform_indices = @transform_2, window_bounds = array<i64: 2, 324>}, {pipeline_mode = #tpu.pipeline_mode<synchronous>, transform_indices = @transform_3, window_bounds = array<i64: 81, 64>}, {pipeline_mode = #tpu.pipeline_mode<synchronous>, transform_indices = @transform_4, window_bounds = array<i64: 1, 64>}, {pipeline_mode = #tpu.pipeline_mode<synchronous>, transform_indices = @transform_5, window_bounds = array<i64: 1, 64>}, {transform_indices = @transform_6, window_bounds = array<i64: 2, 1>}]} {
    %c0 = arith.constant 0 : index
    %c0_0 = arith.constant 0 : index
    %0 = vector.load %arg3[%c0, %c0_0] : memref<2x324xf32, #tpu.memory_space<vmem>>, vector<2x81xf32>
    %c0_1 = arith.constant 0 : index
    %1 = memref.load %arg2[%c0_1] : memref<4xf32, #tpu.memory_space<smem>>
    %2 = vector.broadcast %1 : f32 to vector<2x81xf32>
    %3 = arith.mulf %0, %2 : vector<2x81xf32>
    %c0_2 = arith.constant 0 : index
    %c81 = arith.constant 81 : index
    %4 = vector.load %arg3[%c0_2, %c81] : memref<2x324xf32, #tpu.memory_space<vmem>>, vector<2x81xf32>
    %c1 = arith.constant 1 : index
    %5 = memref.load %arg2[%c1] : memref<4xf32, #tpu.memory_space<smem>>
    %6 = vector.broadcast %5 : f32 to vector<2x81xf32>
    %7 = arith.mulf %4, %6 : vector<2x81xf32>
    %c0_3 = arith.constant 0 : index
    %c162 = arith.constant 162 : index
    %8 = vector.load %arg3[%c0_3, %c162] : memref<2x324xf32, #tpu.memory_space<vmem>>, vector<2x81xf32>
    %c2 = arith.constant 2 : index
    %9 = memref.load %arg2[%c2] : memref<4xf32, #tpu.memory_space<smem>>
    %10 = vector.broadcast %9 : f32 to vector<2x81xf32>
    %11 = arith.mulf %8, %10 : vector<2x81xf32>
    %c0_4 = arith.constant 0 : index
    %c243 = arith.constant 243 : index
    %12 = vector.load %arg3[%c0_4, %c243] : memref<2x324xf32, #tpu.memory_space<vmem>>, vector<2x81xf32>
    %c3 = arith.constant 3 : index
    %13 = memref.load %arg2[%c3] : memref<4xf32, #tpu.memory_space<smem>>
    %14 = vector.broadcast %13 : f32 to vector<2x81xf32>
    %15 = arith.mulf %12, %14 : vector<2x81xf32>
    %16 = arith.addf %3, %7 : vector<2x81xf32>
    %17 = arith.addf %11, %15 : vector<2x81xf32>
    %18 = arith.addf %16, %17 : vector<2x81xf32>
    %c0_5 = arith.constant 0 : index
    %19 = memref.load %arg1[%c0_5] : memref<2xf32, #tpu.memory_space<smem>>
    %20 = vector.broadcast %19 : f32 to vector<2x81xf32>
    %21 = arith.addf %18, %20 : vector<2x81xf32>
    %cst = arith.constant 0.00999999977 : f32
    %22 = vector.broadcast %cst : f32 to vector<2x81xf32>
    %23 = arith.mulf %21, %22 : vector<2x81xf32>
    %24 = arith.maximumf %21, %23 : vector<2x81xf32>
    %c0_6 = arith.constant 0 : index
    %c0_7 = arith.constant 0 : index
    %25 = vector.load %arg4[%c0_6, %c0_7] : memref<81x64xf32, #tpu.memory_space<vmem>>, vector<81x64xf32>
    %cst_8 = arith.constant dense<0.000000e+00> : vector<2x64xf32>
    %26 = tpu.matmul %24, %25, %cst_8 {dimension_numbers = #tpu.dot_dimension_numbers<[1], [0], [0], [1], [0, 0, 1, 1], [], []>} : vector<2x81xf32>, vector<81x64xf32>, vector<2x64xf32> -> vector<2x64xf32>
    %c0_9 = arith.constant 0 : index
    %c0_10 = arith.constant 0 : index
    %27 = vector.load %arg5[%c0_9, %c0_10] : memref<1x64xf32, #tpu.memory_space<vmem>>, vector<1x64xf32>
    %28 = vector.broadcast %27 : vector<1x64xf32> to vector<2x64xf32>
    %29 = arith.addf %26, %28 : vector<2x64xf32>
    %cst_11 = arith.constant 0.00999999977 : f32
    %30 = vector.broadcast %cst_11 : f32 to vector<2x64xf32>
    %31 = arith.mulf %29, %30 : vector<2x64xf32>
    %32 = arith.maximumf %29, %31 : vector<2x64xf32>
    %c0_12 = arith.constant 0 : index
    %c0_13 = arith.constant 0 : index
    %33 = vector.load %arg6[%c0_12, %c0_13] : memref<1x64xf32, #tpu.memory_space<vmem>>, vector<1x64xf32>
    %34 = vector.broadcast %33 : vector<1x64xf32> to vector<2x64xf32>
    %35 = arith.mulf %32, %34 : vector<2x64xf32>
    %cst_14 = arith.constant dense<0.000000e+00> : vector<2xf32>
    %36 = vector.multi_reduction <add>, %35, %cst_14 [1] : vector<2x64xf32> to vector<2xf32>
    %37 = vector.shape_cast %36 : vector<2xf32> to vector<2x1xf32>
    %c1_15 = arith.constant 1 : index
    %38 = memref.load %arg1[%c1_15] : memref<2xf32, #tpu.memory_space<smem>>
    %39 = vector.broadcast %38 : f32 to vector<2x1xf32>
    %40 = arith.addf %37, %39 : vector<2x1xf32>
    %41 = math.tanh %40 : vector<2x1xf32>
    %c0_16 = arith.constant 0 : index
    %c0_17 = arith.constant 0 : index
    %42 = vector.load %arg7[%c0_16, %c0_17] : memref<2x1xf32, #tpu.memory_space<vmem>>, vector<2x1xf32>
    tpu.vector_store %arg7[%c0_16, %c0_17], %41 {strides = array<i32>} : memref<2x1xf32, #tpu.memory_space<vmem>>, vector<2x1xf32>,
    return
  }
  func.func @transform_0(%arg0: i32) -> i32 {
    %c0_i32 = arith.constant 0 : i32
    %c0_i32_0 = arith.constant 0 : i32
    return %c0_i32 : i32
  }
  func.func @transform_1(%arg0: i32) -> i32 {
    %c0_i32 = arith.constant 0 : i32
    %c0_i32_0 = arith.constant 0 : i32
    return %c0_i32 : i32
  }
  func.func @transform_2(%arg0: i32) -> (i32, i32) {
    %c0_i32 = arith.constant 0 : i32
    %c0_i32_0 = arith.constant 0 : i32
    return %arg0, %c0_i32 : i32, i32
  }
  func.func @transform_3(%arg0: i32) -> (i32, i32) {
    %c0_i32 = arith.constant 0 : i32
    %c0_i32_0 = arith.constant 0 : i32
    %c0_i32_1 = arith.constant 0 : i32
    return %c0_i32, %c0_i32_0 : i32, i32
  }
  func.func @transform_4(%arg0: i32) -> (i32, i32) {
    %c0_i32 = arith.constant 0 : i32
    %c0_i32_0 = arith.constant 0 : i32
    %c0_i32_1 = arith.constant 0 : i32
    return %c0_i32, %c0_i32_0 : i32, i32
  }
  func.func @transform_5(%arg0: i32) -> (i32, i32) {
    %c0_i32 = arith.constant 0 : i32
    %c0_i32_0 = arith.constant 0 : i32
    %c0_i32_1 = arith.constant 0 : i32
    return %c0_i32, %c0_i32_0 : i32, i32
  }
  func.func @transform_6(%arg0: i32) -> (i32, i32) {
    %c0_i32 = arith.constant 0 : i32
    %c0_i32_0 = arith.constant 0 : i32
    return %arg0, %c0_i32 : i32, i32
  }
}

</mosaic_0001>

<bundles_post_ra>
// kernel: tpu_custom_call.1
= control target key start
LH: loop header
LB: loop body
LE: loop exit
PB: predicated region body
PF: predicated region fallthrough
CT: control target
= control target key end

     0   :  { %11 = vsyncpa [#allocation3], 0  ;;  %s412_s0 = inlined_call_operand.vmem [shape: f32[2], index: 0, kind: input, shape index: {}]   ;;  %s413_s1 = inlined_call_operand.vmem [shape: f32[4], index: 1, kind: input, shape index: {}]   ;;  %s414_s2 = inlined_call_operand.vmem [shape: f32[2,324], index: 2, kind: input, shape index: {}]   ;;  %s415_s3 = inlined_call_operand.vmem [shape: f32[81,64], index: 3, kind: input, shape index: {}]   ;;  %s416_s4 = inlined_call_operand.vmem [shape: f32[1,64], index: 4, kind: input, shape index: {}]   ;;  %s417_s5 = inlined_call_operand.vmem [shape: f32[1,64], index: 5, kind: input, shape index: {}]   ;;  %s418_s6 = inlined_call_operand.vmem [shape: f32[2,1], index: 6, kind: output, shape index: {}]  }
   0x1   :  { %s19_s23 = sshll.u32 %s412_s0, 4  ;;  %s20_s23 = int_to_ptr.vmem [resolvable:$true] %s19_s23 }
   0x2   :  { %12 = vsyncpa [#allocation5], 0  ;;  %s29_s26 = sshll.u32 %s413_s1, 4  ;;  %s280_s27 = scalar_lea.vmem %s20_s23, 16  ;;  %s30_s26 = int_to_ptr.vmem [resolvable:$true] %s29_s26 }
   0x3   :  { %p281_p0 = scmp.ne.s32.totalorder %s20_s23, %s280_s27  ;;  %p285_p1 = scmp.lt.s32.totalorder %s20_s23, %s20_s23 }
   0x4   :  { %p286_p2 = scmp.lt.s32.totalorder %s280_s27, %s280_s27 }
   0x6   :  { %p287_p3 = por %p286_p2, %p285_p1 }
   0x8   :  { %p288_p4 = pnand %p287_p3, %p281_p0 }
   0xa   :  { %291 = shalt.err (!%p288_p4)
}
   0xb   :  { %s308_s28 = smov [#allocation2]   ;;  %s292_s29 = scalar_lea.vmem %s30_s26, 16 }
   0xc   :  { %22 = dma.vmem_to_smem %s20_s23, 16, %s308_s28, [#allocation3]  }
   0xd   :  { %p293_p5 = scmp.ne.s32.totalorder %s30_s26, %s292_s29  ;;  %p297_p6 = scmp.lt.s32.totalorder %s30_s26, %s30_s26 }
   0xe   :  { %p298_p7 = scmp.lt.s32.totalorder %s292_s29, %s292_s29 }
  0x10   :  { %p299_p8 = por %p298_p7, %p297_p6 }
  0x12   :  { %p300_p9 = pnand %p299_p8, %p293_p5 }
  0x14   :  { %303 = shalt.err (!%p300_p9)
}
  0x15   :  { %s309_s0 = smov [#allocation4]  }
  0x16   :  { %32 = dma.vmem_to_smem %s30_s26, 16, %s309_s0, [#allocation5]  }
  0x17   :  { %304 = dma.done.wait [#allocation3], 16  }
  0x18   :  { %305 = vsyncadd [#allocation3], 4294967280 }
  0x19   :  { %306 = dma.done.wait [#allocation5], 16  }
  0x1a   :  { %307 = vsyncadd [#allocation5], 4294967280 }
  0x1b   :  { %47 = sfence }
  0x1c   :  { %s213_s1 = sld [smem:[#allocation4 + $0x3]]  ;;  %s211_s30 = sld [smem:[#allocation4 + $0x1]]  ;;  %v89_v0 = vld [vmem:[%s415_s3] sm:$0xff]  ;;  %v90_v1 = vld [vmem:[%s415_s3 + $0x8] sm:$0xff]  ;;  %v310_v2 = vmov 0.0|0.0   ;;  %v91_v4 = vld [vmem:[%s415_s3 + $0x10] sm:$0xff] }
  0x1d   :  { %256 = vmatprep.subr.bf16.mxu0 %v310_v2  ;;  %v257_v3 = vpack.c.bf16 %v90_v1, %v89_v0  ;;  %v92_v5 = vld [vmem:[%s415_s3 + $0x18] sm:$0xff]  ;;  %v60_v6 = vld [vmem:[%s414_s2 + $0x2] sm:$0xf]  ;;  %v94_v11 = vld [vmem:[%s415_s3 + $0x28] sm:$0xff]  ;;  %s311_s23 = smov 47   ;;  %s212_s28 = sld [smem:[#allocation4 + $0x2]] }
  0x1e   :  { %v260_v7 = vpack.c.bf16 %v92_v5, %v91_v4  ;;  %v52_v9 = vld [vmem:[%s414_s2] sm:$0xf]  ;;  %v95_v16 = vld [vmem:[%s415_s3 + $0x30] sm:$0xff]  ;;  %v96_v17 = vld [vmem:[%s415_s3 + $0x38] sm:$0xff]  ;;  %v312_v24 = vmov 0.0   ;;  %vm111_vm0 = vcmask 1040384  }
  0x1f   :  { %258 = vmatpush3.bf16.msra.mxu0 %v257_v3  ;;  %v93_v10 = vld [vmem:[%s415_s3 + $0x20] sm:$0xff]  ;;  %v266_v18 = vpack.c.bf16 %v96_v17, %v95_v16  ;;  %v98_v20 = vld [vmem:[%s415_s3 + $0x48] sm:$0xff]  ;;  %v99_v25 = vld [vmem:[%s415_s3 + $0x50] sm:$0x1]  ;;  %vm68_vm1 = vcmask 384000   ;;  %vm313_vm2 = vmmov 0  }
  0x20   :  { %259 = vmatprep.subr.bf16.mxu0 %v310_v2  ;;  %v263_v15 = vpack.c.bf16 %v94_v11, %v93_v10  ;;  %v97_v19 = vld [vmem:[%s415_s3 + $0x40] sm:$0xff]  ;;  %253 = vmatprep.mubr.msk.f32.mxu0 %vm313_vm2, %v312_v24  ;;  %s314_s11 = smov 94   ;;  %s49_s12 = sld [smem:[#allocation4]]  ;;  %vm107_vm3 = vcmask 662528   ;;  %vm195_vm4 = vcmask 517120   ;;  %vm203_vm5 = vcmask 1024  }
  0x21   :  { %v269_v21 = vpack.c.bf16 %v98_v20, %v97_v19  ;;  %v56_v22 = vld [vmem:[%s414_s2 + $0x2] sm:$0x3]  ;;  %s84_s13 = sld [smem:[#allocation2]]  ;;  %v48_v33 = vld [vmem:[%s414_s2] sm:$0x3]  ;;  %s218_s18 = sld [smem:[#allocation2 + $0x1]] }
  0x22   :  { %v62_v8 = vstv %s213_s1  ;;  %v54_v13 = vstv %s211_s30  ;;  %v214_v44 = vld [vmem:[%s416_s4] ss:$0 sm:$0xff] }
  0x23   :  { %v63_v12 = vmul.f32 %v62_v8, %v60_v6  ;;  %v55_v14 = vmul.f32 %v54_v13, %v52_v9  ;;  %261 = vmatpush3.bf16.msra.mxu0 %v260_v7  ;;  %v58_v23 = vstv %s212_s28  ;;  %v217_v49 = vld [vmem:[%s417_s5] ss:$0 sm:$0xff] }
  0x24   :  { %262 = vmatprep.subr.bf16.mxu0 %v310_v2  ;;  %v59_v27 = vmul.f32 %v58_v23, %v56_v22 }
  0x25   :  { %73 = vrot.lane.b32.xlu0 %v63_v12, %s311_s23 }
  0x26   :  { %v50_v34 = vstv %s49_s12 }
  0x27   :  { %264 = vmatpush3.bf16.msra.mxu0 %v263_v15  ;;  %v51_v35 = vmul.f32 %v50_v34, %v48_v33  ;;  %v85_v38 = vstv %s84_s13  ;;  %v200_v53 = vstv %s218_s18 }
  0x28   :  { %265 = vmatprep.subr.bf16.mxu0 %v310_v2 }
  0x29   :  { %65 = vrot.lane.b32.xlu0 %v55_v14, %s311_s23 }
  0x2b   :  { %267 = vmatpush3.bf16.msra.mxu0 %v266_v18 }
  0x2c   :  { %268 = vmatprep.subr.bf16.mxu0 %v310_v2 }
  0x2f   :  { %270 = vmatpush3.bf16.msra.mxu0 %v269_v21 }
  0x30   :  { %251 = vmatprep.subr.mxu0 %v312_v24 }
  0x33   :  { %252 = vmatpush3.msk.msra.mxu0 %vm111_vm0, %v99_v25 }
  0x97   :  { %v74_v26 = vpop.permute.xlu0 %73 }
  0x98   :  { %v75_v28 = vrot.slane %v74_v26, 2 }
  0x9a   :  { %v76_v29 = vsel %vm68_vm1, %v74_v26, %v75_v28 }
  0x9b   :  { %v78_v30 = vadd.f32 %v76_v29, %v59_v27  ;;  %v66_v31 = vpop.permute.xlu0 %65 }
  0x9c   :  { %v67_v32 = vrot.slane %v66_v31, 2 }
  0x9d   :  { %80 = vrot.lane.b32.xlu1 %v78_v30, %s314_s11 }
  0x9e   :  { %v69_v36 = vsel %vm68_vm1, %v66_v31, %v67_v32 }
  0x9f   :  { %v71_v37 = vadd.f32 %v69_v36, %v51_v35 }
 0x10f   :  { %v81_v39 = vpop.permute.xlu1 %80 }
 0x110   :  { %v83_v40 = vadd.f32 %v81_v39, %v71_v37 }
 0x112   :  { %v86_v41 = vadd.f32 %v85_v38, %v83_v40 }
 0x114   :  { %v87_v42 = vmul.f32 0.01, %v86_v41 }
 0x116   :  { %v88_v43 = vmax.f32 %v86_v41, %v87_v42 }
 0x118   :  { %254 = vmatmul.mubr.msk.f32.vlgmr.msra.gmra.mrb[0].mxu0 %vm107_vm3, %v88_v43 }
 0x1eb   :  { %v181_v45 = vpop.f32.mrb[0].mxu0 }
 0x1ec   :  { %v182_v46 = vadd.f32 %v214_v44, %v181_v45  ;;  %v255_v47 = vpop.f32.mrb[1].mxu0 }
 0x1ee   :  { %v185_v48 = vmul.f32 0.01, %v182_v46 }
 0x1f0   :  { %v186_v50 = vmax.f32 %v182_v46, %v185_v48 }
 0x1f2   :  { %v194_v51 = vmul.f32 %v217_v49, %v186_v50 }
 0x1f4   :  { %v196_v52 = vsel %vm195_vm4, %v194_v51, 0.0 }
 0x1f5   :  { %197 = vadd.xlane.f32.xlu1 %v196_v52 }
 0x282   :  { %v198_v54 = vpop.xlane.xlu1 %197 }
 0x283   :  { %v201_v55 = vadd.f32 %v200_v53, %v198_v54 }
 0x285   :  { %278 = vtanh.f32 %v201_v55 }
 0x28f   :  { %v279_v56 = vpop.eup %278 }
 0x290   :  { %204 = vst.msk [vmem:[%s418_s6] sm:$0x3] %vm203_vm5, %v279_v56 }
 0x291   :  { %209 = vsyncpa [#allocation3], 1 }
 0x292   :  { %210 = vsyncpa [#allocation5], 1 }

</bundles_post_ra>
